<compile_context>
chip_gen: v5e
topology: v5e:2x2
jax: 0.10.0
libtpu: 0.0.40
codegen_flags: <defaults>
</compile_context>

<pallas_src>
import functools
import math

import jax
import jax.numpy as jnp
from jax.experimental import pallas as pl
from jax.experimental.pallas import tpu as pltpu


def encoder_block_kernel(
    x_ref,       # (Bt, S, D)
    wqkv_ref,    # (D, 3D)  per-head interleaved [q_h|k_h|v_h] columns
    bqkv_ref,    # (1, 3D)
    wo_ref,      # (D, D)
    bo_ref,      # (1, D)
    g1_ref,      # (1, D)   LayerNorm1 weight
    be1_ref,     # (1, D)   LayerNorm1 bias
    w1_ref,      # (D, F)
    b1_ref,      # (1, F)
    w2_ref,      # (F, D)
    b2_ref,      # (1, D)
    g2_ref,      # (1, D)   LayerNorm2 weight
    be2_ref,     # (1, D)   LayerNorm2 bias
    out_ref,     # (Bt, S, D)
    values_ref,  # (Bt*S, D) f32 VMEM scratch: concatenated per-head attn outputs
    *,
    num_heads: int,
    head_dim: int,
):
    bt, s, d = x_ref.shape
    rows = bt * s
    hd = head_dim
    cdt = x_ref.dtype  # MXU operand dtype; f32 accumulation everywhere

    x2d = x_ref[...].reshape(rows, d)                              # (rows, D)

    # ---- QKV projection: one big (rows, D) @ (D, 3D) matmul, f32 accumulate ----
    qkv = jnp.dot(x2d, wqkv_ref[...], preferred_element_type=jnp.float32)
    qkv = qkv + bqkv_ref[...].astype(jnp.float32)                  # (rows, 3D) f32

    # ---- Multi-head self-attention, batched over the batch-block ---------------
    # TODO(synk): for long sequences (S >= ~1024) tile the KV axis with an
    # online-softmax (flash-style) accumulator instead of full (S, S) logits.
    scale = 1.0 / math.sqrt(float(hd))
    for h in range(num_heads):                                     # static unroll
        base = 3 * hd * h
        q = (qkv[:, base:base + hd] * scale).reshape(bt, s, hd)
        k = qkv[:, base + hd:base + 2 * hd].reshape(bt, s, hd)
        v = qkv[:, base + 2 * hd:base + 3 * hd].reshape(bt, s, hd)
        logits = jnp.einsum("bqd,bkd->bqk", q.astype(cdt), k.astype(cdt),
                            preferred_element_type=jnp.float32)    # (bt, S, S)
        m = jnp.max(logits, axis=-1, keepdims=True)
        p = jnp.exp(logits - m)                                    # EUP exp
        denom = jnp.sum(p, axis=-1, keepdims=True)
        o_h = jnp.einsum("bqk,bkd->bqd", p.astype(cdt), v.astype(cdt),
                         preferred_element_type=jnp.float32)
        o_h = o_h * pl.reciprocal(denom, approx=True)              # EUP reciprocal
        # write this head's output straight at its column offset (no concatenate)
        values_ref[:, h * hd:(h + 1) * hd] = o_h.reshape(rows, hd)

    # ---- output projection ------------------------------------------------------
    attn = jnp.dot(values_ref[...].astype(cdt), wo_ref[...],
                   preferred_element_type=jnp.float32)
    attn = attn + bo_ref[...].astype(jnp.float32)                  # (rows, D) f32

    # ---- residual + LayerNorm (dropout p=0.0 -> identity); LN math in f32 -------
    def layernorm(z, g_ref, b_ref):
        mu = jnp.mean(z, axis=-1, keepdims=True)
        c = z - mu
        var = jnp.mean(c * c, axis=-1, keepdims=True)
        return (c * jax.lax.rsqrt(var + 1e-5) * g_ref[...].astype(jnp.float32)
                + b_ref[...].astype(jnp.float32))                  # EUP rsqrt

    x1 = x2d.astype(jnp.float32) + attn
    xn1 = layernorm(x1, g1_ref, be1_ref)

    # ---- feed-forward MLP --------------------------------------------------------
    # TODO(synk): for large dim_feedforward, tile the MLP over F (extra 'arbitrary'
    # grid axis + f32 accumulator) so w1/w2/h1 need not be fully VMEM resident.
    h1 = jnp.dot(xn1.astype(cdt), w1_ref[...], preferred_element_type=jnp.float32)
    h1 = jnp.maximum(h1 + b1_ref[...].astype(jnp.float32), 0.0)    # ReLU
    ff = jnp.dot(h1.astype(cdt), w2_ref[...], preferred_element_type=jnp.float32)
    ff = ff + b2_ref[...].astype(jnp.float32)

    # ---- residual + LayerNorm2 ----------------------------------------------------
    out = layernorm(xn1 + ff, g2_ref, be2_ref)
    out_ref[...] = out.reshape(bt, s, d).astype(out_ref.dtype)


def _pick_block_b(B, S, target_rows=128):
    """Pick the batch-block so each grid step feeds ~>=128 rows to the MXU, while
    keeping >=2 grid steps when possible (v7x shards a 'parallel' axis over 2 TCs)."""
    bt = max(1, min(B, target_rows // max(S, 1)))
    while bt > 1 and B // bt < 2:
        bt -= 1
    while B % bt != 0:
        bt -= 1
    return bt


def encoder_block(x, params, *, num_heads, block_b=None):
    B, S, D = x.shape
    F = params["w1"].shape[1]
    head_dim = D // num_heads
    bt = block_b if block_b is not None else _pick_block_b(B, S)
    assert B % bt == 0

    def full(shape):
        # resident weight: same full block at every grid step (constant index_map,
        # so Pallas does not re-DMA it between steps).
        # TODO(synk): on v7x (64 MiB VMEM) single-buffer these constant blocks
        # (pipeline_mode=pl.Buffered(1)) once weight sizes approach the VMEM limit.
        return pl.BlockSpec(shape, lambda b: (0,) * len(shape))

    kernel = functools.partial(
        encoder_block_kernel, num_heads=num_heads, head_dim=head_dim
    )

    return pl.pallas_call(
        kernel,
        out_shape=jax.ShapeDtypeStruct((B, S, D), x.dtype),
        grid_spec=pltpu.PrefetchScalarGridSpec(
            num_scalar_prefetch=0,
            grid=(B // bt,),
            in_specs=[
                pl.BlockSpec((bt, S, D), lambda b: (b, 0, 0)),   # x
                full((D, 3 * D)), full((1, 3 * D)),              # wqkv, bqkv
                full((D, D)), full((1, D)),                      # wo, bo
                full((1, D)), full((1, D)),                      # gamma1, beta1
                full((D, F)), full((1, F)),                      # w1, b1
                full((F, D)), full((1, D)),                      # w2, b2
                full((1, D)), full((1, D)),                      # gamma2, beta2
            ],
            out_specs=pl.BlockSpec((bt, S, D), lambda b: (b, 0, 0)),
            scratch_shapes=[pltpu.VMEM((bt * S, D), jnp.float32)],
        ),
        compiler_params=pltpu.CompilerParams(
            dimension_semantics=("parallel",),
            vmem_limit_bytes=48 * 1024 * 1024,
        ),
    )(
        x,
        params["wqkv"], params["bqkv"],
        params["wo"], params["bo"],
        params["gamma1"], params["beta1"],
        params["w1"], params["b1"],
        params["w2"], params["b2"],
        params["gamma2"], params["beta2"],
    )


def reference_encoder_block(x, params, *, num_heads):
    """Pure-JAX reference mirroring the PyTorch module (dropout=0)."""
    B, S, D = x.shape
    hd = D // num_heads
    x = x.astype(jnp.float32)

    qkv = x @ params["wqkv"] + params["bqkv"][0]                  # (B,S,3D)
    qkv = qkv.reshape(B, S, num_heads, 3 * hd).transpose(0, 2, 1, 3)
    q, k, v = qkv[..., :hd], qkv[..., hd:2 * hd], qkv[..., 2 * hd:]
    logits = jnp.einsum("bhqd,bhkd->bhqk", q, k) / math.sqrt(hd)
    attn = jax.nn.softmax(logits, axis=-1)
    vals = jnp.einsum("bhqk,bhkd->bhqd", attn, v)
    vals = vals.transpose(0, 2, 1, 3).reshape(B, S, D)
    attn_out = vals @ params["wo"] + params["bo"][0]

    def ln(z, g, b):
        mu = jnp.mean(z, -1, keepdims=True)
        var = jnp.mean((z - mu) ** 2, -1, keepdims=True)
        return (z - mu) / jnp.sqrt(var + 1e-5) * g[0] + b[0]

    x1 = ln(x + attn_out, params["gamma1"], params["beta1"])
    h1 = jax.nn.relu(x1 @ params["w1"] + params["b1"][0])
    ff = h1 @ params["w2"] + params["b2"][0]
    return ln(x1 + ff, params["gamma2"], params["beta2"])


def init_params(key, input_dim, num_heads, dim_feedforward):
    D, F = input_dim, dim_feedforward
    ks = jax.random.split(key, 8)
    s = 0.1
    return {
        # stored pre-transposed so the kernel does y = x @ W + b
        "wqkv": (jax.random.normal(ks[0], (D, 3 * D), jnp.float32) * s),
        "bqkv": jnp.zeros((1, 3 * D), jnp.float32),
        "wo":   (jax.random.normal(ks[1], (D, D), jnp.float32) * s),
        "bo":   (jax.random.normal(ks[2], (1, D), jnp.float32) * s),
        "gamma1": jnp.ones((1, D), jnp.float32),
        "beta1":  jnp.zeros((1, D), jnp.float32),
        "w1":   (jax.random.normal(ks[3], (D, F), jnp.float32) * s),
        "b1":   (jax.random.normal(ks[4], (1, F), jnp.float32) * s),
        "w2":   (jax.random.normal(ks[5], (F, D), jnp.float32) * s),
        "b2":   (jax.random.normal(ks[6], (1, D), jnp.float32) * s),
        "gamma2": jnp.ones((1, D), jnp.float32),
        "beta2":  jnp.zeros((1, D), jnp.float32),
    }


if __name__ == "__main__":
    B, S, D, H, F = 2, 8, 32, 4, 64   # batch, seq, input_dim, num_heads, dim_ff

    key = jax.random.PRNGKey(0)
    kx, kp = jax.random.split(key)
    x = jax.random.normal(kx, (B, S, D), jnp.float32)
    params = init_params(kp, D, H, F)

    out = encoder_block(x, params, num_heads=H)
    out = jax.block_until_ready(out)

    ref = reference_encoder_block(x, params, num_heads=H)
    assert out.shape == (B, S, D)
    # tolerance leaves room for the EUP approximate-reciprocal softmax normalization
    assert jnp.allclose(out, ref, rtol=5e-3, atol=5e-3), (
        float(jnp.max(jnp.abs(out - ref)))
    )
    print("KERNEL_OK")
</pallas_src>

<mosaic_0001>
module attributes {stable_mosaic.version = 11 : i64} {
  func.func @encoder_block_kernel(%arg0: i32, %arg1: memref<1x8x32xf32, #tpu.memory_space<vmem>>, %arg2: memref<32x96xf32, #tpu.memory_space<vmem>>, %arg3: memref<1x96xf32, #tpu.memory_space<vmem>>, %arg4: memref<32x32xf32, #tpu.memory_space<vmem>>, %arg5: memref<1x32xf32, #tpu.memory_space<vmem>>, %arg6: memref<1x32xf32, #tpu.memory_space<vmem>>, %arg7: memref<1x32xf32, #tpu.memory_space<vmem>>, %arg8: memref<32x64xf32, #tpu.memory_space<vmem>>, %arg9: memref<1x64xf32, #tpu.memory_space<vmem>>, %arg10: memref<64x32xf32, #tpu.memory_space<vmem>>, %arg11: memref<1x32xf32, #tpu.memory_space<vmem>>, %arg12: memref<1x32xf32, #tpu.memory_space<vmem>>, %arg13: memref<1x32xf32, #tpu.memory_space<vmem>>, %arg14: memref<1x8x32xf32, #tpu.memory_space<vmem>>, %arg15: memref<8x32xf32, #tpu.memory_space<vmem>>) attributes {dimension_semantics = [#tpu.dimension_semantics<parallel>], iteration_bounds = array<i64: 2>, scalar_prefetch = 0 : i64, scratch_operands = 1 : i64, tpu.core_type = #tpu.core_type<tc>, window_params = [{transform_indices = @transform_0, window_bounds = array<i64: 1, 8, 32>}, {pipeline_mode = #tpu.pipeline_mode<synchronous>, transform_indices = @transform_1, window_bounds = array<i64: 32, 96>}, {pipeline_mode = #tpu.pipeline_mode<synchronous>, transform_indices = @transform_2, window_bounds = array<i64: 1, 96>}, {pipeline_mode = #tpu.pipeline_mode<synchronous>, transform_indices = @transform_3, window_bounds = array<i64: 32, 32>}, {pipeline_mode = #tpu.pipeline_mode<synchronous>, transform_indices = @transform_4, window_bounds = array<i64: 1, 32>}, {pipeline_mode = #tpu.pipeline_mode<synchronous>, transform_indices = @transform_5, window_bounds = array<i64: 1, 32>}, {pipeline_mode = #tpu.pipeline_mode<synchronous>, transform_indices = @transform_6, window_bounds = array<i64: 1, 32>}, {pipeline_mode = #tpu.pipeline_mode<synchronous>, transform_indices = @transform_7, window_bounds = array<i64: 32, 64>}, {pipeline_mode = #tpu.pipeline_mode<synchronous>, transform_indices = @transform_8, window_bounds = array<i64: 1, 64>}, {pipeline_mode = #tpu.pipeline_mode<synchronous>, transform_indices = @transform_9, window_bounds = array<i64: 64, 32>}, {pipeline_mode = #tpu.pipeline_mode<synchronous>, transform_indices = @transform_10, window_bounds = array<i64: 1, 32>}, {pipeline_mode = #tpu.pipeline_mode<synchronous>, transform_indices = @transform_11, window_bounds = array<i64: 1, 32>}, {pipeline_mode = #tpu.pipeline_mode<synchronous>, transform_indices = @transform_12, window_bounds = array<i64: 1, 32>}, {transform_indices = @transform_13, window_bounds = array<i64: 1, 8, 32>}]} {
    %c0 = arith.constant 0 : index
    %c0_0 = arith.constant 0 : index
    %c0_1 = arith.constant 0 : index
    %0 = vector.load %arg1[%c0, %c0_0, %c0_1] : memref<1x8x32xf32, #tpu.memory_space<vmem>>, vector<1x8x32xf32>
    %1 = vector.shape_cast %0 : vector<1x8x32xf32> to vector<8x32xf32>
    %c0_2 = arith.constant 0 : index
    %c0_3 = arith.constant 0 : index
    %2 = vector.load %arg2[%c0_2, %c0_3] : memref<32x96xf32, #tpu.memory_space<vmem>>, vector<32x96xf32>
    %cst = arith.constant dense<0.000000e+00> : vector<8x96xf32>
    %3 = tpu.matmul %1, %2, %cst {dimension_numbers = #tpu.dot_dimension_numbers<[1], [0], [0], [1], [0, 0, 1, 1], [], []>} : vector<8x32xf32>, vector<32x96xf32>, vector<8x96xf32> -> vector<8x96xf32>
    %c0_4 = arith.constant 0 : index
    %c0_5 = arith.constant 0 : index
    %4 = vector.load %arg3[%c0_4, %c0_5] : memref<1x96xf32, #tpu.memory_space<vmem>>, vector<1x96xf32>
    %5 = vector.broadcast %4 : vector<1x96xf32> to vector<8x96xf32>
    %6 = arith.addf %3, %5 : vector<8x96xf32>
    %7 = vector.extract_strided_slice %6 {offsets = [0, 0], sizes = [8, 8], strides = [1, 1]} : vector<8x96xf32> to vector<8x8xf32>
    %cst_6 = arith.constant 0.353553385 : f32
    %8 = vector.broadcast %cst_6 : f32 to vector<8x8xf32>
    %9 = arith.mulf %7, %8 : vector<8x8xf32>
    %10 = vector.shape_cast %9 : vector<8x8xf32> to vector<1x8x8xf32>
    %11 = vector.extract_strided_slice %6 {offsets = [0, 8], sizes = [8, 8], strides = [1, 1]} : vector<8x96xf32> to vector<8x8xf32>
    %12 = vector.shape_cast %11 : vector<8x8xf32> to vector<1x8x8xf32>
    %13 = vector.extract_strided_slice %6 {offsets = [0, 16], sizes = [8, 8], strides = [1, 1]} : vector<8x96xf32> to vector<8x8xf32>
    %14 = vector.shape_cast %13 : vector<8x8xf32> to vector<1x8x8xf32>
    "tpu.trace_start"() <{level = 10 : i32, message = "bqd,bkd->bqk"}> : () -> ()
    %cst_7 = arith.constant dense<0.000000e+00> : vector<1x8x8xf32>
    %15 = tpu.matmul %10, %12, %cst_7 {dimension_numbers = #tpu.dot_dimension_numbers<[2], [2], [1], [1], [0, 0, 0, 1, 1, 1], [0], [0]>} : vector<1x8x8xf32>, vector<1x8x8xf32>, vector<1x8x8xf32> -> vector<1x8x8xf32>
    "tpu.trace_stop"() : () -> ()
    %cst_8 = arith.constant dense<0xFF800000> : vector<1x8xf32>
    %16 = vector.multi_reduction <maximumf>, %15, %cst_8 [2] : vector<1x8x8xf32> to vector<1x8xf32>
    %17 = vector.shape_cast %16 : vector<1x8xf32> to vector<1x8x1xf32>
    %18 = vector.broadcast %17 : vector<1x8x1xf32> to vector<1x8x8xf32>
    %19 = arith.subf %15, %18 : vector<1x8x8xf32>
    %20 = math.exp %19 : vector<1x8x8xf32>
    %cst_9 = arith.constant dense<0.000000e+00> : vector<1x8xf32>
    %21 = vector.multi_reduction <add>, %20, %cst_9 [2] : vector<1x8x8xf32> to vector<1x8xf32>
    %22 = vector.shape_cast %21 : vector<1x8xf32> to vector<1x8x1xf32>
    "tpu.trace_start"() <{level = 10 : i32, message = "bqk,bkd->bqd"}> : () -> ()
    %cst_10 = arith.constant dense<0.000000e+00> : vector<1x8x8xf32>
    %23 = tpu.matmul %20, %14, %cst_10 {dimension_numbers = #tpu.dot_dimension_numbers<[2], [1], [1], [2], [0, 0, 0, 1, 1, 2], [0], [0]>} : vector<1x8x8xf32>, vector<1x8x8xf32>, vector<1x8x8xf32> -> vector<1x8x8xf32>
    "tpu.trace_stop"() : () -> ()
    %24 = tpu.reciprocal %22 {approx = true} : vector<1x8x1xf32> -> vector<1x8x1xf32>
    %25 = vector.broadcast %24 : vector<1x8x1xf32> to vector<1x8x8xf32>
    %26 = arith.mulf %23, %25 : vector<1x8x8xf32>
    %27 = vector.shape_cast %26 : vector<1x8x8xf32> to vector<8x8xf32>
    %c0_11 = arith.constant 0 : index
    %c0_12 = arith.constant 0 : index
    %28 = vector.load %arg15[%c0_11, %c0_12] : memref<8x32xf32, #tpu.memory_space<vmem>>, vector<8x8xf32>
    tpu.vector_store %arg15[%c0_11, %c0_12], %27 {strides = array<i32>} : memref<8x32xf32, #tpu.memory_space<vmem>>, vector<8x8xf32>,
    %29 = vector.extract_strided_slice %6 {offsets = [0, 24], sizes = [8, 8], strides = [1, 1]} : vector<8x96xf32> to vector<8x8xf32>
    %cst_13 = arith.constant 0.353553385 : f32
    %30 = vector.broadcast %cst_13 : f32 to vector<8x8xf32>
    %31 = arith.mulf %29, %30 : vector<8x8xf32>
    %32 = vector.shape_cast %31 : vector<8x8xf32> to vector<1x8x8xf32>
    %33 = vector.extract_strided_slice %6 {offsets = [0, 32], sizes = [8, 8], strides = [1, 1]} : vector<8x96xf32> to vector<8x8xf32>
    %34 = vector.shape_cast %33 : vector<8x8xf32> to vector<1x8x8xf32>
    %35 = vector.extract_strided_slice %6 {offsets = [0, 40], sizes = [8, 8], strides = [1, 1]} : vector<8x96xf32> to vector<8x8xf32>
    %36 = vector.shape_cast %35 : vector<8x8xf32> to vector<1x8x8xf32>
    "tpu.trace_start"() <{level = 10 : i32, message = "bqd,bkd->bqk"}> : () -> ()
    %cst_14 = arith.constant dense<0.000000e+00> : vector<1x8x8xf32>
    %37 = tpu.matmul %32, %34, %cst_14 {dimension_numbers = #tpu.dot_dimension_numbers<[2], [2], [1], [1], [0, 0, 0, 1, 1, 1], [0], [0]>} : vector<1x8x8xf32>, vector<1x8x8xf32>, vector<1x8x8xf32> -> vector<1x8x8xf32>
    "tpu.trace_stop"() : () -> ()
    %cst_15 = arith.constant dense<0xFF800000> : vector<1x8xf32>
    %38 = vector.multi_reduction <maximumf>, %37, %cst_15 [2] : vector<1x8x8xf32> to vector<1x8xf32>
    %39 = vector.shape_cast %38 : vector<1x8xf32> to vector<1x8x1xf32>
    %40 = vector.broadcast %39 : vector<1x8x1xf32> to vector<1x8x8xf32>
    %41 = arith.subf %37, %40 : vector<1x8x8xf32>
    %42 = math.exp %41 : vector<1x8x8xf32>
    %cst_16 = arith.constant dense<0.000000e+00> : vector<1x8xf32>
    %43 = vector.multi_reduction <add>, %42, %cst_16 [2] : vector<1x8x8xf32> to vector<1x8xf32>
    %44 = vector.shape_cast %43 : vector<1x8xf32> to vector<1x8x1xf32>
    "tpu.trace_start"() <{level = 10 : i32, message = "bqk,bkd->bqd"}> : () -> ()
    %cst_17 = arith.constant dense<0.000000e+00> : vector<1x8x8xf32>
    %45 = tpu.matmul %42, %36, %cst_17 {dimension_numbers = #tpu.dot_dimension_numbers<[2], [1], [1], [2], [0, 0, 0, 1, 1, 2], [0], [0]>} : vector<1x8x8xf32>, vector<1x8x8xf32>, vector<1x8x8xf32> -> vector<1x8x8xf32>
    "tpu.trace_stop"() : () -> ()
    %46 = tpu.reciprocal %44 {approx = true} : vector<1x8x1xf32> -> vector<1x8x1xf32>
    %47 = vector.broadcast %46 : vector<1x8x1xf32> to vector<1x8x8xf32>
    %48 = arith.mulf %45, %47 : vector<1x8x8xf32>
    %49 = vector.shape_cast %48 : vector<1x8x8xf32> to vector<8x8xf32>
    %c0_18 = arith.constant 0 : index
    %c8 = arith.constant 8 : index
    %50 = vector.load %arg15[%c0_18, %c8] : memref<8x32xf32, #tpu.memory_space<vmem>>, vector<8x8xf32>
    tpu.vector_store %arg15[%c0_18, %c8], %49 {strides = array<i32>} : memref<8x32xf32, #tpu.memory_space<vmem>>, vector<8x8xf32>,
    %51 = vector.extract_strided_slice %6 {offsets = [0, 48], sizes = [8, 8], strides = [1, 1]} : vector<8x96xf32> to vector<8x8xf32>
    %cst_19 = arith.constant 0.353553385 : f32
    %52 = vector.broadcast %cst_19 : f32 to vector<8x8xf32>
    %53 = arith.mulf %51, %52 : vector<8x8xf32>
    %54 = vector.shape_cast %53 : vector<8x8xf32> to vector<1x8x8xf32>
    %55 = vector.extract_strided_slice %6 {offsets = [0, 56], sizes = [8, 8], strides = [1, 1]} : vector<8x96xf32> to vector<8x8xf32>
    %56 = vector.shape_cast %55 : vector<8x8xf32> to vector<1x8x8xf32>
    %57 = vector.extract_strided_slice %6 {offsets = [0, 64], sizes = [8, 8], strides = [1, 1]} : vector<8x96xf32> to vector<8x8xf32>
    %58 = vector.shape_cast %57 : vector<8x8xf32> to vector<1x8x8xf32>
    "tpu.trace_start"() <{level = 10 : i32, message = "bqd,bkd->bqk"}> : () -> ()
    %cst_20 = arith.constant dense<0.000000e+00> : vector<1x8x8xf32>
    %59 = tpu.matmul %54, %56, %cst_20 {dimension_numbers = #tpu.dot_dimension_numbers<[2], [2], [1], [1], [0, 0, 0, 1, 1, 1], [0], [0]>} : vector<1x8x8xf32>, vector<1x8x8xf32>, vector<1x8x8xf32> -> vector<1x8x8xf32>
    "tpu.trace_stop"() : () -> ()
    %cst_21 = arith.constant dense<0xFF800000> : vector<1x8xf32>
    %60 = vector.multi_reduction <maximumf>, %59, %cst_21 [2] : vector<1x8x8xf32> to vector<1x8xf32>
    %61 = vector.shape_cast %60 : vector<1x8xf32> to vector<1x8x1xf32>
    %62 = vector.broadcast %61 : vector<1x8x1xf32> to vector<1x8x8xf32>
    %63 = arith.subf %59, %62 : vector<1x8x8xf32>
    %64 = math.exp %63 : vector<1x8x8xf32>
    %cst_22 = arith.constant dense<0.000000e+00> : vector<1x8xf32>
    %65 = vector.multi_reduction <add>, %64, %cst_22 [2] : vector<1x8x8xf32> to vector<1x8xf32>
    %66 = vector.shape_cast %65 : vector<1x8xf32> to vector<1x8x1xf32>
    "tpu.trace_start"() <{level = 10 : i32, message = "bqk,bkd->bqd"}> : () -> ()
    %cst_23 = arith.constant dense<0.000000e+00> : vector<1x8x8xf32>
    %67 = tpu.matmul %64, %58, %cst_23 {dimension_numbers = #tpu.dot_dimension_numbers<[2], [1], [1], [2], [0, 0, 0, 1, 1, 2], [0], [0]>} : vector<1x8x8xf32>, vector<1x8x8xf32>, vector<1x8x8xf32> -> vector<1x8x8xf32>
    "tpu.trace_stop"() : () -> ()
    %68 = tpu.reciprocal %66 {approx = true} : vector<1x8x1xf32> -> vector<1x8x1xf32>
    %69 = vector.broadcast %68 : vector<1x8x1xf32> to vector<1x8x8xf32>
    %70 = arith.mulf %67, %69 : vector<1x8x8xf32>
    %71 = vector.shape_cast %70 : vector<1x8x8xf32> to vector<8x8xf32>
    %c0_24 = arith.constant 0 : index
    %c16 = arith.constant 16 : index
    %72 = vector.load %arg15[%c0_24, %c16] : memref<8x32xf32, #tpu.memory_space<vmem>>, vector<8x8xf32>
    tpu.vector_store %arg15[%c0_24, %c16], %71 {strides = array<i32>} : memref<8x32xf32, #tpu.memory_space<vmem>>, vector<8x8xf32>,
    %73 = vector.extract_strided_slice %6 {offsets = [0, 72], sizes = [8, 8], strides = [1, 1]} : vector<8x96xf32> to vector<8x8xf32>
    %cst_25 = arith.constant 0.353553385 : f32
    %74 = vector.broadcast %cst_25 : f32 to vector<8x8xf32>
    %75 = arith.mulf %73, %74 : vector<8x8xf32>
    %76 = vector.shape_cast %75 : vector<8x8xf32> to vector<1x8x8xf32>
    %77 = vector.extract_strided_slice %6 {offsets = [0, 80], sizes = [8, 8], strides = [1, 1]} : vector<8x96xf32> to vector<8x8xf32>
    %78 = vector.shape_cast %77 : vector<8x8xf32> to vector<1x8x8xf32>
    %79 = vector.extract_strided_slice %6 {offsets = [0, 88], sizes = [8, 8], strides = [1, 1]} : vector<8x96xf32> to vector<8x8xf32>
    %80 = vector.shape_cast %79 : vector<8x8xf32> to vector<1x8x8xf32>
    "tpu.trace_start"() <{level = 10 : i32, message = "bqd,bkd->bqk"}> : () -> ()
    %cst_26 = arith.constant dense<0.000000e+00> : vector<1x8x8xf32>
    %81 = tpu.matmul %76, %78, %cst_26 {dimension_numbers = #tpu.dot_dimension_numbers<[2], [2], [1], [1], [0, 0, 0, 1, 1, 1], [0], [0]>} : vector<1x8x8xf32>, vector<1x8x8xf32>, vector<1x8x8xf32> -> vector<1x8x8xf32>
    "tpu.trace_stop"() : () -> ()
    %cst_27 = arith.constant dense<0xFF800000> : vector<1x8xf32>
    %82 = vector.multi_reduction <maximumf>, %81, %cst_27 [2] : vector<1x8x8xf32> to vector<1x8xf32>
    %83 = vector.shape_cast %82 : vector<1x8xf32> to vector<1x8x1xf32>
    %84 = vector.broadcast %83 : vector<1x8x1xf32> to vector<1x8x8xf32>
    %85 = arith.subf %81, %84 : vector<1x8x8xf32>
    %86 = math.exp %85 : vector<1x8x8xf32>
    %cst_28 = arith.constant dense<0.000000e+00> : vector<1x8xf32>
    %87 = vector.multi_reduction <add>, %86, %cst_28 [2] : vector<1x8x8xf32> to vector<1x8xf32>
    %88 = vector.shape_cast %87 : vector<1x8xf32> to vector<1x8x1xf32>
    "tpu.trace_start"() <{level = 10 : i32, message = "bqk,bkd->bqd"}> : () -> ()
    %cst_29 = arith.constant dense<0.000000e+00> : vector<1x8x8xf32>
    %89 = tpu.matmul %86, %80, %cst_29 {dimension_numbers = #tpu.dot_dimension_numbers<[2], [1], [1], [2], [0, 0, 0, 1, 1, 2], [0], [0]>} : vector<1x8x8xf32>, vector<1x8x8xf32>, vector<1x8x8xf32> -> vector<1x8x8xf32>
    "tpu.trace_stop"() : () -> ()
    %90 = tpu.reciprocal %88 {approx = true} : vector<1x8x1xf32> -> vector<1x8x1xf32>
    %91 = vector.broadcast %90 : vector<1x8x1xf32> to vector<1x8x8xf32>
    %92 = arith.mulf %89, %91 : vector<1x8x8xf32>
    %93 = vector.shape_cast %92 : vector<1x8x8xf32> to vector<8x8xf32>
    %c0_30 = arith.constant 0 : index
    %c24 = arith.constant 24 : index
    %94 = vector.load %arg15[%c0_30, %c24] : memref<8x32xf32, #tpu.memory_space<vmem>>, vector<8x8xf32>
    tpu.vector_store %arg15[%c0_30, %c24], %93 {strides = array<i32>} : memref<8x32xf32, #tpu.memory_space<vmem>>, vector<8x8xf32>,
    %c0_31 = arith.constant 0 : index
    %c0_32 = arith.constant 0 : index
    %95 = vector.load %arg15[%c0_31, %c0_32] : memref<8x32xf32, #tpu.memory_space<vmem>>, vector<8x32xf32>
    %c0_33 = arith.constant 0 : index
    %c0_34 = arith.constant 0 : index
    %96 = vector.load %arg4[%c0_33, %c0_34] : memref<32x32xf32, #tpu.memory_space<vmem>>, vector<32x32xf32>
    %cst_35 = arith.constant dense<0.000000e+00> : vector<8x32xf32>
    %97 = tpu.matmul %95, %96, %cst_35 {dimension_numbers = #tpu.dot_dimension_numbers<[1], [0], [0], [1], [0, 0, 1, 1], [], []>} : vector<8x32xf32>, vector<32x32xf32>, vector<8x32xf32> -> vector<8x32xf32>
    %c0_36 = arith.constant 0 : index
    %c0_37 = arith.constant 0 : index
    %98 = vector.load %arg5[%c0_36, %c0_37] : memref<1x32xf32, #tpu.memory_space<vmem>>, vector<1x32xf32>
    %99 = vector.broadcast %98 : vector<1x32xf32> to vector<8x32xf32>
    %100 = arith.addf %97, %99 : vector<8x32xf32>
    %101 = arith.addf %1, %100 : vector<8x32xf32>
    %cst_38 = arith.constant dense<0.000000e+00> : vector<8xf32>
    %102 = vector.multi_reduction <add>, %101, %cst_38 [1] : vector<8x32xf32> to vector<8xf32>
    %103 = vector.shape_cast %102 : vector<8xf32> to vector<8x1xf32>
    %cst_39 = arith.constant 3.200000e+01 : f32
    %104 = vector.broadcast %cst_39 : f32 to vector<8x1xf32>
    %105 = arith.divf %103, %104 : vector<8x1xf32>
    %106 = vector.broadcast %105 : vector<8x1xf32> to vector<8x32xf32>
    %107 = arith.subf %101, %106 : vector<8x32xf32>
    %108 = arith.mulf %107, %107 : vector<8x32xf32>
    %cst_40 = arith.constant dense<0.000000e+00> : vector<8xf32>
    %109 = vector.multi_reduction <add>, %108, %cst_40 [1] : vector<8x32xf32> to vector<8xf32>
    %110 = vector.shape_cast %109 : vector<8xf32> to vector<8x1xf32>
    %cst_41 = arith.constant 3.200000e+01 : f32
    %111 = vector.broadcast %cst_41 : f32 to vector<8x1xf32>
    %112 = arith.divf %110, %111 : vector<8x1xf32>
    %cst_42 = arith.constant 9.99999974E-6 : f32
    %113 = vector.broadcast %cst_42 : f32 to vector<8x1xf32>
    %114 = arith.addf %112, %113 : vector<8x1xf32>
    %115 = math.rsqrt %114 : vector<8x1xf32>
    %116 = vector.broadcast %115 : vector<8x1xf32> to vector<8x32xf32>
    %117 = arith.mulf %107, %116 : vector<8x32xf32>
    %c0_43 = arith.constant 0 : index
    %c0_44 = arith.constant 0 : index
    %118 = vector.load %arg6[%c0_43, %c0_44] : memref<1x32xf32, #tpu.memory_space<vmem>>, vector<1x32xf32>
    %119 = vector.broadcast %118 : vector<1x32xf32> to vector<8x32xf32>
    %120 = arith.mulf %117, %119 : vector<8x32xf32>
    %c0_45 = arith.constant 0 : index
    %c0_46 = arith.constant 0 : index
    %121 = vector.load %arg7[%c0_45, %c0_46] : memref<1x32xf32, #tpu.memory_space<vmem>>, vector<1x32xf32>
    %122 = vector.broadcast %121 : vector<1x32xf32> to vector<8x32xf32>
    %123 = arith.addf %120, %122 : vector<8x32xf32>
    %c0_47 = arith.constant 0 : index
    %c0_48 = arith.constant 0 : index
    %124 = vector.load %arg8[%c0_47, %c0_48] : memref<32x64xf32, #tpu.memory_space<vmem>>, vector<32x64xf32>
    %cst_49 = arith.constant dense<0.000000e+00> : vector<8x64xf32>
    %125 = tpu.matmul %123, %124, %cst_49 {dimension_numbers = #tpu.dot_dimension_numbers<[1], [0], [0], [1], [0, 0, 1, 1], [], []>} : vector<8x32xf32>, vector<32x64xf32>, vector<8x64xf32> -> vector<8x64xf32>
    %c0_50 = arith.constant 0 : index
    %c0_51 = arith.constant 0 : index
    %126 = vector.load %arg9[%c0_50, %c0_51] : memref<1x64xf32, #tpu.memory_space<vmem>>, vector<1x64xf32>
    %127 = vector.broadcast %126 : vector<1x64xf32> to vector<8x64xf32>
    %128 = arith.addf %125, %127 : vector<8x64xf32>
    %cst_52 = arith.constant 0.000000e+00 : f32
    %129 = vector.broadcast %cst_52 : f32 to vector<8x64xf32>
    %130 = arith.maximumf %128, %129 : vector<8x64xf32>
    %c0_53 = arith.constant 0 : index
    %c0_54 = arith.constant 0 : index
    %131 = vector.load %arg10[%c0_53, %c0_54] : memref<64x32xf32, #tpu.memory_space<vmem>>, vector<64x32xf32>
    %cst_55 = arith.constant dense<0.000000e+00> : vector<8x32xf32>
    %132 = tpu.matmul %130, %131, %cst_55 {dimension_numbers = #tpu.dot_dimension_numbers<[1], [0], [0], [1], [0, 0, 1, 1], [], []>} : vector<8x64xf32>, vector<64x32xf32>, vector<8x32xf32> -> vector<8x32xf32>
    %c0_56 = arith.constant 0 : index
    %c0_57 = arith.constant 0 : index
    %133 = vector.load %arg11[%c0_56, %c0_57] : memref<1x32xf32, #tpu.memory_space<vmem>>, vector<1x32xf32>
    %134 = vector.broadcast %133 : vector<1x32xf32> to vector<8x32xf32>
    %135 = arith.addf %132, %134 : vector<8x32xf32>
    %136 = arith.addf %123, %135 : vector<8x32xf32>
    %cst_58 = arith.constant dense<0.000000e+00> : vector<8xf32>
    %137 = vector.multi_reduction <add>, %136, %cst_58 [1] : vector<8x32xf32> to vector<8xf32>
    %138 = vector.shape_cast %137 : vector<8xf32> to vector<8x1xf32>
    %cst_59 = arith.constant 3.200000e+01 : f32
    %139 = vector.broadcast %cst_59 : f32 to vector<8x1xf32>
    %140 = arith.divf %138, %139 : vector<8x1xf32>
    %141 = vector.broadcast %140 : vector<8x1xf32> to vector<8x32xf32>
    %142 = arith.subf %136, %141 : vector<8x32xf32>
    %143 = arith.mulf %142, %142 : vector<8x32xf32>
    %cst_60 = arith.constant dense<0.000000e+00> : vector<8xf32>
    %144 = vector.multi_reduction <add>, %143, %cst_60 [1] : vector<8x32xf32> to vector<8xf32>
    %145 = vector.shape_cast %144 : vector<8xf32> to vector<8x1xf32>
    %cst_61 = arith.constant 3.200000e+01 : f32
    %146 = vector.broadcast %cst_61 : f32 to vector<8x1xf32>
    %147 = arith.divf %145, %146 : vector<8x1xf32>
    %cst_62 = arith.constant 9.99999974E-6 : f32
    %148 = vector.broadcast %cst_62 : f32 to vector<8x1xf32>
    %149 = arith.addf %147, %148 : vector<8x1xf32>
    %150 = math.rsqrt %149 : vector<8x1xf32>
    %151 = vector.broadcast %150 : vector<8x1xf32> to vector<8x32xf32>
    %152 = arith.mulf %142, %151 : vector<8x32xf32>
    %c0_63 = arith.constant 0 : index
    %c0_64 = arith.constant 0 : index
    %153 = vector.load %arg12[%c0_63, %c0_64] : memref<1x32xf32, #tpu.memory_space<vmem>>, vector<1x32xf32>
    %154 = vector.broadcast %153 : vector<1x32xf32> to vector<8x32xf32>
    %155 = arith.mulf %152, %154 : vector<8x32xf32>
    %c0_65 = arith.constant 0 : index
    %c0_66 = arith.constant 0 : index
    %156 = vector.load %arg13[%c0_65, %c0_66] : memref<1x32xf32, #tpu.memory_space<vmem>>, vector<1x32xf32>
    %157 = vector.broadcast %156 : vector<1x32xf32> to vector<8x32xf32>
    %158 = arith.addf %155, %157 : vector<8x32xf32>
    %159 = vector.shape_cast %158 : vector<8x32xf32> to vector<1x8x32xf32>
    %c0_67 = arith.constant 0 : index
    %c0_68 = arith.constant 0 : index
    %c0_69 = arith.constant 0 : index
    %160 = vector.load %arg14[%c0_67, %c0_68, %c0_69] : memref<1x8x32xf32, #tpu.memory_space<vmem>>, vector<1x8x32xf32>
    tpu.vector_store %arg14[%c0_67, %c0_68, %c0_69], %159 {strides = array<i32>} : memref<1x8x32xf32, #tpu.memory_space<vmem>>, vector<1x8x32xf32>,
    return
  }
  func.func @transform_0(%arg0: i32) -> (i32, i32, i32) {
    %c0_i32 = arith.constant 0 : i32
    %c0_i32_0 = arith.constant 0 : i32
    %c0_i32_1 = arith.constant 0 : i32
    return %arg0, %c0_i32, %c0_i32_0 : i32, i32, i32
  }
  func.func @transform_1(%arg0: i32) -> (i32, i32) {
    %c0_i32 = arith.constant 0 : i32
    %c0_i32_0 = arith.constant 0 : i32
    %c0_i32_1 = arith.constant 0 : i32
    return %c0_i32, %c0_i32_0 : i32, i32
  }
  func.func @transform_2(%arg0: i32) -> (i32, i32) {
    %c0_i32 = arith.constant 0 : i32
    %c0_i32_0 = arith.constant 0 : i32
    %c0_i32_1 = arith.constant 0 : i32
    return %c0_i32, %c0_i32_0 : i32, i32
  }
  func.func @transform_3(%arg0: i32) -> (i32, i32) {
    %c0_i32 = arith.constant 0 : i32
    %c0_i32_0 = arith.constant 0 : i32
    %c0_i32_1 = arith.constant 0 : i32
    return %c0_i32, %c0_i32_0 : i32, i32
  }
  func.func @transform_4(%arg0: i32) -> (i32, i32) {
    %c0_i32 = arith.constant 0 : i32
    %c0_i32_0 = arith.constant 0 : i32
    %c0_i32_1 = arith.constant 0 : i32
    return %c0_i32, %c0_i32_0 : i32, i32
  }
  func.func @transform_5(%arg0: i32) -> (i32, i32) {
    %c0_i32 = arith.constant 0 : i32
    %c0_i32_0 = arith.constant 0 : i32
    %c0_i32_1 = arith.constant 0 : i32
    return %c0_i32, %c0_i32_0 : i32, i32
  }
  func.func @transform_6(%arg0: i32) -> (i32, i32) {
    %c0_i32 = arith.constant 0 : i32
    %c0_i32_0 = arith.constant 0 : i32
    %c0_i32_1 = arith.constant 0 : i32
    return %c0_i32, %c0_i32_0 : i32, i32
  }
  func.func @transform_7(%arg0: i32) -> (i32, i32) {
    %c0_i32 = arith.constant 0 : i32
    %c0_i32_0 = arith.constant 0 : i32
    %c0_i32_1 = arith.constant 0 : i32
    return %c0_i32, %c0_i32_0 : i32, i32
  }
  func.func @transform_8(%arg0: i32) -> (i32, i32) {
    %c0_i32 = arith.constant 0 : i32
    %c0_i32_0 = arith.constant 0 : i32
    %c0_i32_1 = arith.constant 0 : i32
    return %c0_i32, %c0_i32_0 : i32, i32
  }
  func.func @transform_9(%arg0: i32) -> (i32, i32) {
    %c0_i32 = arith.constant 0 : i32
    %c0_i32_0 = arith.constant 0 : i32
    %c0_i32_1 = arith.constant 0 : i32
    return %c0_i32, %c0_i32_0 : i32, i32
  }
  func.func @transform_10(%arg0: i32) -> (i32, i32) {
    %c0_i32 = arith.constant 0 : i32
    %c0_i32_0 = arith.constant 0 : i32
    %c0_i32_1 = arith.constant 0 : i32
    return %c0_i32, %c0_i32_0 : i32, i32
  }
  func.func @transform_11(%arg0: i32) -> (i32, i32) {
    %c0_i32 = arith.constant 0 : i32
    %c0_i32_0 = arith.constant 0 : i32
    %c0_i32_1 = arith.constant 0 : i32
    return %c0_i32, %c0_i32_0 : i32, i32
  }
  func.func @transform_12(%arg0: i32) -> (i32, i32) {
    %c0_i32 = arith.constant 0 : i32
    %c0_i32_0 = arith.constant 0 : i32
    %c0_i32_1 = arith.constant 0 : i32
    return %c0_i32, %c0_i32_0 : i32, i32
  }
  func.func @transform_13(%arg0: i32) -> (i32, i32, i32) {
    %c0_i32 = arith.constant 0 : i32
    %c0_i32_0 = arith.constant 0 : i32
    %c0_i32_1 = arith.constant 0 : i32
    return %arg0, %c0_i32, %c0_i32_0 : i32, i32, i32
  }
}

</mosaic_0001>

<bundles_post_ra>
// kernel: tpu_custom_call.1
= control target key start
LH: loop header
LB: loop body
LE: loop exit
PB: predicated region body
PF: predicated region fallthrough
CT: control target
= control target key end

     0   :  { %s1588_s0 = inlined_call_operand.hbm [shape: f32[2,8,32], index: 0, kind: input, shape index: {}]   ;;  %s1589_s1 = inlined_call_operand.vmem [shape: f32[32,96], index: 1, kind: input, shape index: {}]   ;;  %s1590_s2 = inlined_call_operand.vmem [shape: f32[1,96], index: 2, kind: input, shape index: {}]   ;;  %s1591_s3 = inlined_call_operand.vmem [shape: f32[32,32], index: 3, kind: input, shape index: {}]   ;;  %s1592_s4 = inlined_call_operand.vmem [shape: f32[1,32], index: 4, kind: input, shape index: {}]   ;;  %s1593_s5 = inlined_call_operand.vmem [shape: f32[1,32], index: 5, kind: input, shape index: {}]   ;;  %s1594_s6 = inlined_call_operand.vmem [shape: f32[1,32], index: 6, kind: input, shape index: {}]   ;;  %s1595_s7 = inlined_call_operand.vmem [shape: f32[32,64], index: 7, kind: input, shape index: {}]   ;;  %s1596_s8 = inlined_call_operand.vmem [shape: f32[1,64], index: 8, kind: input, shape index: {}]   ;;  %s1597_s9 = inlined_call_operand.vmem [shape: f32[64,32], index: 9, kind: input, shape index: {}]   ;;  %s1598_s10 = inlined_call_operand.vmem [shape: f32[1,32], index: 10, kind: input, shape index: {}]   ;;  %s1599_s11 = inlined_call_operand.vmem [shape: f32[1,32], index: 11, kind: input, shape index: {}]   ;;  %s1600_s12 = inlined_call_operand.vmem [shape: f32[1,32], index: 12, kind: input, shape index: {}]   ;;  %s1601_s13 = inlined_call_operand.hbm [shape: f32[2,8,32], index: 13, kind: output, shape index: {}]  }
   0x1   :  { %1609 = sst [smem:[#allocation15_spill]] %s1600_s12 }
   0x2   :  { %18 = vsyncpa [#allocation4], 0 }
   0x3   :  { %20 = vsyncpa [#allocation4 + $0x1], 0 }
   0x4   :  { %21 = vsyncpa [#allocation5], 0 }
   0x5   :  { %23 = vsyncpa [#allocation5 + $0x1], 0  ;;  %s1334_s25 = smov 0   ;;  %s1336_s26 = smov 0  }
   0x6   :  { %s1338_s27 = smov 0   ;;  %s1340_s28 = smov 0  }
   0x7 LB: > { %1610 = sst [smem:[#allocation9_spill]] %s1235_s25  ;;  %s1355_s29 = sadd.s32 4294967295, %s1247_s28   ;;  %s1247_s28 = sphi %s1340_s28, %s1626_s28   ;;  %s1243_s27 = sphi %s1338_s27, %s1628_s27   ;;  %s1239_s26 = sphi %s1336_s26, %s1630_s26   ;;  %s1235_s25 = sphi %s1334_s25, %s1629_s25  }
   0x8   : > { %1611 = sst [smem:[#allocation10_spill]] %s1243_s27  ;;  %s1032_s30 = sadd.s32 4294967294, %s1247_s28  }
   0x9   : > { %s1359_s14 = sadd.s32 1, %s1247_s28   ;;  %s36_s15 = sadd.s32 1, %s1243_s27 }
   0xa   : > { %1612 = sst [smem:[#allocation11_spill]] %s1359_s14  ;;  %s33_s16 = ssub.s32 %s1247_s28, %s1359_s14 }
   0xb   : > { %p43_p0 = scmp.ne.s32.totalorder %s1243_s27, %s1239_s26  ;;  %p34_p1 = scmp.eq.s32.totalorder %s33_s16, 0 }
   0xc   : > { %p44_p2 = scmp.eq.s32.totalorder %s1247_s28, 0  ;;  %p49_p3 = scmp.ne.s32.totalorder %s1239_s26, %s1235_s25 }
   0xd   : > { %p50_p4 = scmp.eq.s32.totalorder %s1355_s29, 0  ;;  %p325_p7 = scmp.eq.s32.totalorder %s1355_s29, 1 }
   0xe   : > { %s1371_s17 = scalar_select %p34_p1, %s1243_s27, %s36_s15  }
   0xf   : > { %p1373_p5 = por %p44_p2, %p43_p0  ;;  %p1377_p6 = por %p50_p4, %p49_p3 }
  0x10   : > { %1613 = sst [smem:[#allocation12_spill]] %s1371_s17  ;;  %p331_p8 = scmp.eq.s32.totalorder %s1032_s30, 1 }
  0x11   : > { %p1072_p10 = scmp.lt.s32.totalorder %s1247_s28, 2  ;;  %p1384_p11 = por %p325_p7, %p43_p0 }
  0x12   : > { %p1388_p12 = por %p331_p8, %p49_p3  ;;  %s387_s22 = sand.u32 1, %s1243_s27  }
  0x13   : > { %s1616_s20 = scalar_select %p1384_p11, 1, 0 }
  0x14   : > { %s1618_s21 = scalar_select %p1388_p12, 1, 0 }
  0x15   : > { %1617 = sst [smem:[#allocation13_spill]] %s1616_s20  ;;  %s1036_s23 = sshll.u32 %s1247_s28, 3 }
  0x16   : > { %1619 = sst [smem:[#allocation14_spill]] %s1618_s21  ;;  %s1035_s24 = sshll.u32 %s387_s22, 3 }
  0x17   : > { %s395_s17 = scalar_lea.hbm %s1588_s0, %s1036_s23  ;;  %s391_s30 = scalar_lea.vmem [#allocation3], %s1035_s24 }
  0x18   : > { %s397_s14 = sshll.u32 %s395_s17, 4  ;;  %s399_s25 = sshll.u32 %s391_s30, 4  ;;  %s398_s14 = int_to_ptr.hbm [resolvable:$true] %s397_s14  ;;  %s400_s25 = int_to_ptr.vmem [resolvable:$true] %s399_s25 }
  0x19   : > { %p1399_p13 = pnand %p1072_p10, %p1373_p5  ;;  %p1037_p0 = scmp.ge.s32.totalorder %s1247_s28, 1 }
  0x1a   : > { %p404_p1 = scmp.lt.s32.totalorder %s1247_s28, 3  ;;  %s388_s27 = scalar_lea.sflag [#allocation4], %s387_s22 }
  0x1b   : > { %s1151_s21 = sshra.s32 %s398_s14, 4  ;;  %p1155_p3 = pneg %p1399_p13  ;;  %s1152_s21 = int_to_ptr.hbm [resolvable:$true] %s1151_s21 }
  0x1c   : > { %s1153_s20 = scalar_lea.hbm %s1152_s21, 8  ;;  %s1158_s18 = scalar_lea.hbm %s1588_s0, 16 }
  0x1d   : > { %p1154_p2 = scmp.ne.s32.totalorder %s1152_s21, %s1153_s20  ;;  %p1159_p5 = scmp.lt.s32.totalorder %s1152_s21, %s1588_s0 }
  0x1e   : > { %p1160_p8 = scmp.lt.s32.totalorder %s1158_s18, %s1153_s20 }
  0x1f   : > { %p1156_p4 = pnand %p1155_p3, %p1154_p2 }
  0x20   : > { %p1161_p10 = por %p1160_p8, %p1159_p5 }
  0x21   : > { %p1157_p7 = pneg %p1156_p4 }
  0x23   : > { %p1162_p9 = pnand %p1161_p10, %p1157_p7 }
  0x25   : > { %1165 = shalt.err (!%p1162_p9)
}
  0x26   : > { %1067 = dma.hbm_to_vmem [thread:$0]  (!%p1399_p13), %s398_s14, 128, %s400_s25, %s388_s27  }
  0x27   : > { %p405_p2 = pnand %p1037_p0, %p404_p1 }
  0x28   : > { %s1420_s22 = sand.u32 (!%p405_p2), 1, %s1239_s26  }
  0x29   : > { %408 = sbr.rel (%p405_p2) target bundleno = 2029 (0x7ed), region = 72  ;;  %s1038_s20 = sshll.u32 (!%p405_p2), %s1420_s22, 3 }
  0x2a   : > { %s411_s21 = scalar_lea.sflag (!%p405_p2), [#allocation4], %s1420_s22  ;;  %s414_s16 = scalar_lea.vmem (!%p405_p2), [#allocation3], %s1038_s20 }
  0x2e   : > { %1226 = dma.done.wait (%p1377_p6), %s411_s21, 128  }
  0x2f   : > { %1228 = vsyncadd (%p1377_p6), %s411_s21, 4294967168  ;;  %v462_v0 = vld [vmem:[%s1589_s1 + $0x18] sm:$0xff]  ;;  %v461_v1 = vld [vmem:[%s1589_s1 + $0x10] sm:$0xff]  ;;  %vm467_vm0 = vcmask 261120   ;;  %s1249_s15 = smov 112   ;;  %s1250_s21 = smov 120  }
  0x30   : > { %483 = vmatpush.msra.mxu0 %v462_v0  ;;  %v460_v2 = vld [vmem:[%s1589_s1 + $0x8] sm:$0xff]  ;;  %v459_v3 = vld [vmem:[%s1589_s1] sm:$0xff]  ;;  %s1251_s12 = smov 104   ;;  %s1253_s25 = smov 88   ;;  %vm495_vm1 = vcmask 64512   ;;  %vm628_vm2 = vcmask 130112  }
  0x31   : > { %v1442_v4 = vld [vmem:[%s414_s16] sm:$0xff]  ;;  %v1121_v5 = vld [vmem:[%s1590_s2] ss:$0 sm:$0xff]  ;;  %s1252_s16 = smov 96   ;;  %s1254_s27 = smov 48   ;;  %vm699_vm3 = vcmask 195712  }
  0x32   : > { %484 = vmatpush.msra.mxu0 %v461_v1  ;;  %s1255_s14 = smov 56   ;;  %s1256_s30 = smov 80   ;;  %v776_v1 = vld [vmem:[%s1591_s3 + $0x18] sm:$0xff]  ;;  %vm770_vm4 = vcmask 261312   ;;  %vm888_vm9 = vcmask 523264  }
  0x33   : > { %s1257_s17 = smov 64   ;;  %s1258_s23 = smov 40  }
  0x34   : > { %485 = vmatpush.msra.mxu0 %v460_v2  ;;  %s1259_s18 = smov 72   ;;  %s1260_s19 = smov 8   ;;  %v775_v2 = vld [vmem:[%s1591_s3 + $0x10] sm:$0xff] }
  0x35   : > { %s1261_s24 = smov 16  }
  0x36   : > { %486 = vmatpush.msra.mxu0 %v459_v3  ;;  %v774_v3 = vld [vmem:[%s1591_s3 + $0x8] sm:$0xff] }
  0x37   : > { %1040 = vmatmul.msk.f32.vlgmr.msra.gmra.mxu0 %vm467_vm0, %v1442_v4 }
  0xb4   : > { %v488_v6 = vpop.f32.mrf.mxu0 }
  0xb5   : > { %v489_v7 = vadd.f32 %v1121_v5, %v488_v6  ;;  %v773_v5 = vld [vmem:[%s1591_s3] sm:$0xff] }
  0xb7   : > { %530 = vrot.lane.b32.xlu2 %v489_v7, %s1249_s15  ;;  %493 = vrot.lane.b32.xlu0 %v489_v7, %s1250_s21  ;;  %v491_v8 = vmul.f32 0.35355338, %v489_v7  ;;  %s1262_s15 = smov 24  }
  0xb9   : > { %559 = vrot.lane.b32.xlu1 %v491_v8, %s1251_s12 }
  0xbf   : > { %561 = vrot.lane.b32.xlu0 %v489_v7, %s1252_s16  ;;  %s947_s16 = scalar_lea.sflag [#allocation5], %s1420_s22 }
  0xc7   : > { %596 = vrot.lane.b32.xlu0 %v489_v7, %s1253_s25  ;;  %s1057_s25 = sshll.u32 %s1355_s29, 3  ;;  %s457_s29 = scalar_lea.vmem [#allocation6], %s1038_s20 }
  0xc8   : > { %s959_s21 = sshll.u32 %s457_s29, 4  ;;  %s1201_s20 = scalar_lea.hbm %s1601_s13, 16  ;;  %s960_s21 = int_to_ptr.vmem [resolvable:$true] %s959_s21 }
  0xcf   : > { %703 = vrot.lane.b32.xlu0 %v489_v7, %s1254_s27 }
  0xd7   : > { %701 = vrot.lane.b32.xlu0 %v491_v8, %s1255_s14 }
  0xdf   : > { %630 = vrot.lane.b32.xlu0 %v491_v8, %s1256_s30 }
 0x111   : > { %v531_v9 = vpop.permute.xlu2 %530 }
 0x112   : > { %551 = vmatpush.msra.mxu2 %v531_v9  ;;  %v1122_v9 = vld [vmem:[%s1592_s4] ss:$0 sm:$0xff] }
 0x129   : > { %v494_v10 = vpop.permute.xlu0 %493 }
 0x12a   : > { %1041 = vmatpush.xpose.msk.msra.mxu1 %vm495_vm1, %v494_v10 }
 0x12b   : > { %v560_v12 = vpop.permute.xlu1 %559 }
 0x12d   : > { %1042 = vmatmul.msk.f32.vlgmr.msra.gmra.mxu1 %vm495_vm1, %v491_v8 }
 0x131   : > { %v562_v11 = vpop.permute.xlu0 %561 }
 0x132   : > { %1044 = vmatpush.xpose.msk.msra.mxu3 %vm495_vm1, %v562_v11 }
 0x135   : > { %1045 = vmatmul.msk.f32.vlgmr.msra.gmra.mxu3 %vm495_vm1, %v560_v12 }
 0x139   : > { %v597_v13 = vpop.permute.xlu0 %596 }
 0x13a   : > { %617 = vmatpush.msrb.mxu2 %v597_v13 }
 0x141   : > { %v704_v21 = vpop.permute.xlu0 %703 }
 0x149   : > { %v702_v24 = vpop.permute.xlu0 %701 }
 0x151   : > { %v631_v30 = vpop.permute.xlu0 %630 }
 0x1aa   : > { %v518_v14 = vpop.f32.mrf.mxu1 }
 0x1ab   : > { %v521_v15 = vsel %vm495_vm1, %v518_v14, -inf }
 0x1ac   : > { %522 = vmax.xlane.f32.xlu1 %v521_v15 }
 0x1b8   : > { %v584_v16 = vpop.f32.mrf.mxu3 }
 0x1b9   : > { %v587_v17 = vsel %vm495_vm1, %v584_v16, -inf }
 0x1ba   : > { %588 = vmax.xlane.f32.xlu2 %v587_v17 }
 0x1c5   : > { %667 = vrot.lane.b32.xlu1 %v489_v7, %s1257_s17 }
 0x1cd   : > { %738 = vrot.lane.b32.xlu1 %v489_v7, %s1258_s23  ;;  %s957_s23 = scalar_lea.hbm %s1601_s13, %s1057_s25 }
 0x1ce   : > { %s961_s12 = sshll.u32 %s957_s23, 4  ;;  %s962_s12 = int_to_ptr.hbm [resolvable:$true] %s961_s12 }
 0x1cf   : > { %s1195_s27 = sshra.s32 %s962_s12, 4  ;;  %s1196_s27 = int_to_ptr.hbm [resolvable:$true] %s1195_s27 }
 0x1d0   : > { %s1197_s25 = scalar_lea.hbm %s1196_s27, 8  ;;  %p1202_p0 = scmp.lt.s32.totalorder %s1196_s27, %s1601_s13 }
 0x1d1   : > { %p1198_p6 = scmp.ne.s32.totalorder %s1196_s27, %s1197_s25  ;;  %p1203_p1 = scmp.lt.s32.totalorder %s1201_s20, %s1197_s25 }
 0x1d2   : > { %632 = vrot.lane.b32.xlu2 %v489_v7, %s1259_s18 }
 0x1d3   : > { %p1199_p9 = pnand %p1198_p6, %p1384_p11  ;;  %p1204_p3 = por %p1203_p1, %p1202_p0 }
 0x1d5   : > { %p1200_p13 = pneg %p1199_p9 }
 0x1d7   : > { %p1205_p4 = pnand %p1204_p3, %p1200_p13 }
 0x21f   : > { %v523_v18 = vpop.xlane.xlu1 %522 }
 0x220   : > { %v524_v19 = vsub.f32 %v518_v14, %v523_v18  ;;  %v1263_v14 = vmov 32.0  }
 0x222   : > { %v525_v20 = vmul.f32 1.442695, %v524_v19 }
 0x224   : > { %1129 = vpow2.f32 %v525_v20 }
 0x22a   : > { %v1130_v22 = vpop.eup %1129 }
 0x22b   : > { %1043 = vmatmul.msk.f32.vlgmr.msra.gmra.mxu2 %vm495_vm1, %v1130_v22  ;;  %v527_v39 = vsel %vm495_vm1, %v1130_v22, 0.0 }
 0x22c   : > { %1050 = vmatpush.xpose.msk.msra.mxu2 %vm495_vm1, %v704_v21 }
 0x22d   : > { %v589_v23 = vpop.xlane.xlu2 %588 }
 0x22e   : > { %v590_v25 = vsub.f32 %v584_v16, %v589_v23 }
 0x230   : > { %v591_v26 = vmul.f32 1.442695, %v590_v25  ;;  %v847_v25 = vld [vmem:[%s1595_s7 + $0x18] sm:$0xff] }
 0x232   : > { %1131 = vpow2.f32 %v591_v26  ;;  %v846_v26 = vld [vmem:[%s1595_s7 + $0x10] sm:$0xff] }
 0x235   : > { %v633_v27 = vpop.permute.xlu2 %632 }
 0x236   : > { %1047 = vmatpush.xpose.msk.msrb.mxu1 %vm495_vm1, %v633_v27  ;;  %v845_v27 = vld [vmem:[%s1595_s7 + $0x8] sm:$0xff] }
 0x237   : > { %v668_v28 = vpop.permute.xlu1 %667 }
 0x238   : > { %v1132_v29 = vpop.eup %1131  ;;  %688 = vmatpush.msrb.mxu3 %v668_v28  ;;  %v844_v28 = vld [vmem:[%s1595_s7] sm:$0xff] }
 0x239   : > { %1046 = vmatmul.msk.f32.vlgmr.msrb.gmra.mxu2 %vm495_vm1, %v1132_v29  ;;  %1048 = vmatmul.msk.f32.vlgmr.msrb.gmra.mxu1 %vm495_vm1, %v631_v30  ;;  %v593_v36 = vsel %vm495_vm1, %v1132_v29, 0.0  ;;  %v883_v29 = vld [vmem:[%s1597_s9 + $0x38] sm:$0xff]  ;;  %v882_v30 = vld [vmem:[%s1597_s9 + $0x30] sm:$0xff] }
 0x23a   : > { %796 = vmatpush.msra.mxu1 %v776_v1  ;;  %867 = vmatpush.msra.mxu3 %v847_v25 }
 0x23b   : > { %900 = vmatpush.msrb.mxu0 %v883_v29 }
 0x23c   : > { %797 = vmatpush.msra.mxu1 %v775_v2  ;;  %868 = vmatpush.msra.mxu3 %v846_v26 }
 0x23d   : > { %901 = vmatpush.msrb.mxu0 %v882_v30 }
 0x23e   : > { %798 = vmatpush.msra.mxu1 %v774_v3  ;;  %869 = vmatpush.msra.mxu3 %v845_v27 }
 0x23f   : > { %v739_v31 = vpop.permute.xlu1 %738 }
 0x240   : > { %759 = vmatpush.msrb.mxu2 %v739_v31  ;;  %799 = vmatpush.msra.mxu1 %v773_v5  ;;  %v881_v31 = vld [vmem:[%s1597_s9 + $0x28] sm:$0xff] }
 0x241   : > { %1051 = vmatmul.msk.f32.vlgmr.msra.gmra.mxu2 %vm495_vm1, %v702_v24  ;;  %870 = vmatpush.msra.mxu3 %v844_v28 }
 0x242   : > { %902 = vmatpush.msrb.mxu0 %v881_v31 }
 0x2ae   : > { %v553_v32 = vpop.f32.mrf.mxu2 }
 0x2b6   : > { %v655_v33 = vpop.f32.mrf.mxu1 }
 0x2b7   : > { %v658_v34 = vsel %vm495_vm1, %v655_v33, -inf }
 0x2b8   : > { %659 = vmax.xlane.f32.xlu2 %v658_v34  ;;  %v880_v34 = vld [vmem:[%s1597_s9 + $0x20] sm:$0xff] }
 0x2b9   : > { %903 = vmatpush.msrb.mxu0 %v880_v34 }
 0x2bc   : > { %v619_v35 = vpop.f32.mrf.mxu2 }
 0x2c0   : > { %594 = vadd.xlane.f32.xlu2 %v593_v36  ;;  %v879_v36 = vld [vmem:[%s1597_s9 + $0x18] sm:$0xff] }
 0x2c1   : > { %904 = vmatpush.msrb.mxu0 %v879_v36 }
 0x2c4   : > { %v726_v37 = vpop.f32.mrf.mxu2 }
 0x2c5   : > { %v729_v38 = vsel %vm495_vm1, %v726_v37, -inf }
 0x2c6   : > { %730 = vmax.xlane.f32.xlu0 %v729_v38 }
 0x2ce   : > { %528 = vadd.xlane.f32.xlu0 %v527_v39 }
 0x32b   : > { %v660_v40 = vpop.xlane.xlu2 %659 }
 0x32c   : > { %v661_v41 = vsub.f32 %v655_v33, %v660_v40 }
 0x32e   : > { %v662_v42 = vmul.f32 1.442695, %v661_v41 }
 0x330   : > { %1133 = vpow2.f32 %v662_v42 }
 0x333   : > { %v595_v53 = vpop.xlane.xlu2 %594 }
 0x336   : > { %v1134_v43 = vpop.eup %1133 }
 0x337   : > { %1049 = vmatmul.msk.f32.vlgmr.msrb.gmra.mxu3 %vm495_vm1, %v1134_v43  ;;  %v664_v44 = vsel %vm495_vm1, %v1134_v43, 0.0  ;;  %v1123_v43 = vld [vmem:[%s1593_s5] ss:$0 sm:$0xff] }
 0x338   : > { %665 = vadd.xlane.f32.xlu1 %v664_v44 }
 0x339   : > { %v731_v45 = vpop.xlane.xlu0 %730 }
 0x33a   : > { %v732_v46 = vsub.f32 %v726_v37, %v731_v45 }
 0x33c   : > { %v733_v47 = vmul.f32 1.442695, %v732_v46  ;;  %v1124_v46 = vld [vmem:[%s1594_s6] ss:$0 sm:$0xff] }
 0x33e   : > { %1135 = vpow2.f32 %v733_v47 }
 0x341   : > { %v529_v48 = vpop.xlane.xlu0 %528 }
 0x342   : > { %1137 = vrcp.f32 %v529_v48 }
 0x343   : > { %1139 = vrcp.f32 %v595_v53 }
 0x344   : > { %v1136_v49 = vpop.eup %1135 }
 0x345   : > { %1052 = vmatmul.msk.f32.vlgmr.msrb.gmra.mxu2 %vm495_vm1, %v1136_v49  ;;  %v735_v50 = vsel %vm495_vm1, %v1136_v49, 0.0  ;;  %v878_v49 = vld [vmem:[%s1597_s9 + $0x10] sm:$0xff] }
 0x346   : > { %736 = vadd.xlane.f32.xlu2 %v735_v50  ;;  %905 = vmatpush.msrb.mxu0 %v878_v49  ;;  %v877_v50 = vld [vmem:[%s1597_s9 + $0x8] sm:$0xff] }
 0x348   : > { %v1138_v51 = vpop.eup %1137  ;;  %906 = vmatpush.msrb.mxu0 %v877_v50 }
 0x349   : > { %v557_v52 = vmul.f32 %v1138_v51, %v553_v32  ;;  %v1140_v54 = vpop.eup %1139  ;;  %v876_v51 = vld [vmem:[%s1597_s9] sm:$0xff] }
 0x34a   : > { %v623_v55 = vmul.f32 %v1140_v54, %v619_v35  ;;  %907 = vmatpush.msrb.mxu0 %v876_v51 }
 0x34b   : > { %558 = vst.msk [vmem:[#allocation2] sm:$0xff] %vm495_vm1, %v557_v52  ;;  %v1125_v52 = vld [vmem:[%s1596_s8] ss:$0 sm:$0xff] }
 0x35e   : > { %625 = vrot.lane.b32.xlu2 %v623_v55, %s1260_s19 }
 0x3ab   : > { %v666_v56 = vpop.xlane.xlu1 %665 }
 0x3ac   : > { %1141 = vrcp.f32 %v666_v56  ;;  %v1126_v56 = vld [vmem:[%s1598_s10] ss:$0 sm:$0xff] }
 0x3b2   : > { %v1142_v58 = vpop.eup %1141 }
 0x3b9   : > { %v737_v57 = vpop.xlane.xlu2 %736 }
 0x3ba   : > { %v690_v59 = vpop.f32.mrf.mxu3  ;;  %1143 = vrcp.f32 %v737_v57 }
 0x3bb   : > { %v694_v60 = vmul.f32 %v1142_v58, %v690_v59  ;;  %1145 = vrcp.f32 %v1263_v14 }
 0x3bd   : > { %696 = vrot.lane.b32.xlu0 %v694_v60, %s1261_s24 }
 0x3c0   : > { %v1144_v62 = vpop.eup %1143 }
 0x3c1   : > { %v626_v61 = vpop.permute.xlu2 %625  ;;  %v1146_v15 = vpop.eup %1145 }
 0x3c2   : > { %629 = vst.msk [vmem:[#allocation2] sm:$0xff] %vm628_vm2, %v626_v61  ;;  %v809_v16 = vmul.f32 32.0, %v1146_v15  ;;  %vm813_vm5 = vweird.f32 %v1146_v15 }
 0x3c4   : > { %v810_v17 = vsub.f32 1.0, %v809_v16 }
 0x3c6   : > { %v811_v18 = vmul.f32 %v1146_v15, %v810_v17 }
 0x3c8   : > { %v761_v63 = vpop.f32.mrf.mxu2  ;;  %v812_v19 = vadd.f32 %v1146_v15, %v811_v18 }
 0x3c9   : > { %v765_v0 = vmul.f32 %v1144_v62, %v761_v63 }
 0x3ca   : > { %v1488_v20 = vsel %vm813_vm5, %v1146_v15, %v812_v19 }
 0x3cb   : > { %767 = vrot.lane.b32.xlu0 %v765_v0, %s1262_s15  ;;  %s1622_s15 = sld [smem:[#allocation15_spill]] }
 0x3d1   : > { %v1128_v15 = vld [vmem:[%s1622_s15] ss:$0 sm:$0xff] }
 0x42f   : > { %v697_v6 = vpop.permute.xlu0 %696 }
 0x430   : > { %700 = vst.msk [vmem:[#allocation2] sm:$0xff] %vm699_vm3, %v697_v6 }
 0x43d   : > { %v768_v7 = vpop.permute.xlu0 %767 }
 0x43e   : > { %771 = vst.msk [vmem:[#allocation2] sm:$0xff] %vm770_vm4, %v768_v7 }
 0x445   : > { %v772_v8 = vld [vmem:[#allocation2] sm:$0xff] }
 0x446   : > { %1053 = vmatmul.msk.f32.vlgmr.msra.gmra.mxu1 %vm467_vm0, %v772_v8 }
 0x4c3   : > { %v801_v10 = vpop.f32.mrf.mxu1 }
 0x4c4   : > { %v802_v11 = vadd.f32 %v1122_v9, %v801_v10 }
 0x4c6   : > { %v804_v12 = vadd.f32 %v802_v11, %v1442_v4 }
 0x4c8   : > { %v805_v13 = vsel %vm467_vm0, %v804_v12, 0.0 }
 0x4c9   : > { %806 = vadd.xlane.f32.xlu2 %v805_v13 }
 0x53c   : > { %v807_v21 = vpop.xlane.xlu2 %806 }
 0x53d   : > { %v815_v22 = vmul.f32 %v1488_v20, %v807_v21 }
 0x53f   : > { %v816_v23 = vsub.f32 %v804_v12, %v815_v22  ;;  %v1127_v12 = vld [vmem:[%s1599_s11] ss:$0 sm:$0xff] }
 0x541   : > { %v817_v24 = vmul.f32 %v816_v23, %v816_v23 }
 0x543   : > { %v818_v4 = vsel %vm467_vm0, %v817_v24, 0.0 }
 0x544   : > { %819 = vadd.xlane.f32.xlu1 %v818_v4 }
 0x5b7   : > { %v820_v32 = vpop.xlane.xlu1 %819 }
 0x5b8   : > { %v821_v33 = vmul.f32 %v820_v32, %v1488_v20 }
 0x5ba   : > { %v822_v35 = vadd.f32 1e-05, %v821_v33 }
 0x5bc   : > { %1147 = vrsqrt.f32 %v822_v35  ;;  %vm829_vm7 = vweird.f32 %v822_v35 }
 0x5c2   : > { %v1148_v37 = vpop.eup %1147 }
 0x5c3   : > { %v824_v38 = vmul.f32 %v1148_v37, %v822_v35  ;;  %vm830_vm6 = vweird.f32 %v1148_v37 }
 0x5c4   : > { %vm831_vm8 = vmor %vm829_vm7, %vm830_vm6 }
 0x5c5   : > { %v825_v39 = vmul.f32 %v1148_v37, %v824_v38 }
 0x5c7   : > { %v826_v40 = vmul.f32 0.5, %v825_v39 }
 0x5c9   : > { %v827_v41 = vsub.f32 1.5, %v826_v40 }
 0x5cb   : > { %v828_v42 = vmul.f32 %v1148_v37, %v827_v41 }
 0x5cd   : > { %v832_v44 = vsel %vm831_vm8, %v1148_v37, %v828_v42 }
 0x5ce   : > { %v833_v45 = vmul.f32 %v832_v44, %v816_v23 }
 0x5d0   : > { %v838_v47 = vmul.f32 %v1123_v43, %v833_v45 }
 0x5d2   : > { %v843_v48 = vadd.f32 %v1124_v46, %v838_v47 }
 0x5d4   : > { %1054 = vmatmul.msk.f32.vlgmr.msra.gmra.mxu3 %vm467_vm0, %v843_v48 }
 0x657   : > { %v872_v53 = vpop.f32.mrf.mxu3 }
 0x658   : > { %v873_v54 = vadd.f32 %v1125_v52, %v872_v53 }
 0x65a   : > { %v875_v55 = vmax.f32 %v873_v54, 0.0 }
 0x65c   : > { %1055 = vmatmul.msk.f32.vlgmr.msrb.gmra.mxu0 %vm888_vm9, %v875_v55 }
 0x6d9   : > { %v909_v57 = vpop.f32.mrf.mxu0 }
 0x6da   : > { %v910_v58 = vadd.f32 %v1126_v56, %v909_v57 }
 0x6dc   : > { %v912_v59 = vadd.f32 %v910_v58, %v843_v48 }
 0x6de   : > { %v913_v60 = vsel %vm467_vm0, %v912_v59, 0.0 }
 0x6df   : > { %914 = vadd.xlane.f32.xlu0 %v913_v60 }
 0x752   : > { %v915_v61 = vpop.xlane.xlu0 %914 }
 0x753   : > { %v916_v62 = vmul.f32 %v915_v61, %v1488_v20 }
 0x755   : > { %v917_v63 = vsub.f32 %v912_v59, %v916_v62 }
 0x757   : > { %v918_v0 = vmul.f32 %v917_v63, %v917_v63 }
 0x759   : > { %v919_v1 = vsel %vm467_vm0, %v918_v0, 0.0 }
 0x75a   : > { %920 = vadd.xlane.f32.xlu1 %v919_v1 }
 0x7cd   : > { %v921_v2 = vpop.xlane.xlu1 %920 }
 0x7ce   : > { %v922_v3 = vmul.f32 %v921_v2, %v1488_v20 }
 0x7d0   : > { %v923_v5 = vadd.f32 1e-05, %v922_v3 }
 0x7d2   : > { %1149 = vrsqrt.f32 %v923_v5  ;;  %vm930_vm11 = vweird.f32 %v923_v5 }
 0x7d8   : > { %v1150_v6 = vpop.eup %1149 }
 0x7d9   : > { %v925_v7 = vmul.f32 %v1150_v6, %v923_v5  ;;  %vm931_vm10 = vweird.f32 %v1150_v6 }
 0x7da   : > { %vm932_vm12 = vmor %vm930_vm11, %vm931_vm10 }
 0x7db   : > { %v926_v8 = vmul.f32 %v1150_v6, %v925_v7 }
 0x7dd   : > { %v927_v9 = vmul.f32 0.5, %v926_v8 }
 0x7df   : > { %v928_v10 = vsub.f32 1.5, %v927_v9 }
 0x7e1   : > { %v929_v11 = vmul.f32 %v1150_v6, %v928_v10 }
 0x7e3   : > { %v933_v13 = vsel %vm932_vm12, %v1150_v6, %v929_v11 }
 0x7e4   : > { %v934_v14 = vmul.f32 %v933_v13, %v917_v63 }
 0x7e6   : > { %v939_v16 = vmul.f32 %v1127_v12, %v934_v14 }
 0x7e8   : > { %v944_v17 = vadd.f32 %v1128_v15, %v939_v16 }
 0x7ea   : > { %945 = vst.msk [vmem:[%s457_s29] sm:$0xff] %vm467_vm0, %v944_v17 }
 0x7eb   : > { %1208 = shalt.err (!%p1205_p4)
}
 0x7ec   : > { %1062 = dma.vmem_to_hbm [thread:$0]  (%p1384_p11), %s960_s21, 128, %s962_s12, %s947_s16  }
 0x7ed PF: > { %s1623_s22 = sld [smem:[#allocation9_spill]]  ;;  %p1625_p7 = scmp.ge.s32.totalorder %s1247_s28, 2 }
 0x7ef   : > { %p1069_p5 = pnand %p1625_p7, %p1388_p12 }
 0x7f1   : > { %p1070_p8 = pneg %p1069_p5 }
 0x7f3   : > { %s973_s24 = sand.u32 1, %s1623_s22  }
 0x7f4   : > { %s974_s15 = scalar_lea.sflag [#allocation5], %s973_s24 }
 0x7f5   : > { %1230 = dma.done.wait (%p1070_p8), %s974_s15, 128  }
 0x7f6   : > { %1232 = vsyncadd (%p1070_p8), %s974_s15, 4294967168  ;;  %s1626_s28 = sld [smem:[#allocation11_spill]]  ;;  %s1629_s25 = smov %s1239_s26 }
 0x7f7   : > { %s1627_s29 = sld [smem:[#allocation10_spill]] }
 0x7f8   : > { %s1628_s27 = sld [smem:[#allocation12_spill]] }
 0x7fc   : > { %p26_p10 = scmp.ge.s32.totalorder %s1626_s28, 4  }
 0x7fd   : > { %s1630_s26 = smov %s1627_s29 }
 0x7fe   :  { %28 = sbr.rel (!%p26_p10) target bundleno = 7 (0x7), region = 117 }
 0x803   :  { %980 = vsyncpa [#allocation4], 1 }
 0x804   :  { %982 = vsyncpa [#allocation4 + $0x1], 1 }
 0x805   :  { %983 = vsyncpa [#allocation5], 1 }
 0x806   :  { %985 = vsyncpa [#allocation5 + $0x1], 1 }

</bundles_post_ra>
